<compile_context>
chip_gen: v6e
topology: v6e:2x2x1
jax: 0.10.0
libtpu: 0.0.40
codegen_flags: <defaults>
</compile_context>

<pallas_src>
import jax
import jax.numpy as jnp
from jax.experimental import pallas as pl
from jax.experimental.pallas import tpu as pltpu


def _round_up(n, m):
    return ((n + m - 1) // m) * m


def _vmem_capacity_bytes():
    """Per-core VMEM capacity; falls back to 128 MiB (v5e/v6e) if unqueryable."""
    try:
        info = pltpu.get_tpu_info()
        cap = getattr(info, "vmem_capacity_bytes", None)
        if cap:
            return int(cap)
    except Exception:
        pass
    return 128 * 2**20


def _choose_tm(M, n_cores=2):
    """M tile: tiny problems -> one tile (per-step overhead dominates, nothing to
    overlap); otherwise target >= 4 grid steps per TensorCore so streamed-tile DMA
    overlaps compute, with tm in [128, 512] to amortize ~0.35us/step and keep the
    MXU M-dim fed."""
    if M <= 256:
        return max(16, _round_up(M, 16))
    tm = _round_up(-(-M // (4 * n_cores)), 16)
    return max(128, min(512, tm))


def mlp_kernel(x_ref, w_ref, b_ref, wo_ref, bo_ref, o_ref):
    # x_ref : (tm, Hp)      bf16 activation tile (streamed per grid step)
    # w_ref : (L, Hp, Hp)   stacked hidden-layer weights (in, out), bf16, resident
    # b_ref : (L, 1, Hp)    stacked hidden-layer biases, f32, resident
    # wo_ref: (Hp, Op)      output-layer weight (in, out), bf16, resident
    # bo_ref: (1, Op)       output-layer bias, f32, resident
    # o_ref : (tm, Op)      output tile
    h = x_ref[...]
    n_layer = w_ref.shape[0]
    for i in range(n_layer):  # static unroll over layers
        acc = jnp.dot(h.astype(w_ref.dtype), w_ref[i],
                      preferred_element_type=jnp.float32)
        h = jnp.maximum(acc + b_ref[i], 0.0)      # bias + ReLU in f32
    # eval-mode dropout == identity
    out = jnp.dot(h.astype(wo_ref.dtype), wo_ref[...],
                  preferred_element_type=jnp.float32) + bo_ref[...]
    o_ref[...] = out.astype(o_ref.dtype)


def _build_mlp_call(Mp, Hp, Op, L, tm, out_dtype, vmem_bytes, parallel,
                    weight_pipeline_mode):
    def const_spec(shape):
        zeros = (0,) * len(shape)
        kwargs = {}
        if weight_pipeline_mode is not None:
            kwargs["pipeline_mode"] = weight_pipeline_mode
        return pl.BlockSpec(shape, lambda i, _z=zeros: _z, **kwargs)

    grid_spec = pl.GridSpec(
        grid=(Mp // tm,),
        in_specs=[
            pl.BlockSpec((tm, Hp), lambda i: (i, 0)),
            const_spec((L, Hp, Hp)),
            const_spec((L, 1, Hp)),
            const_spec((Hp, Op)),
            const_spec((1, Op)),
        ],
        out_specs=pl.BlockSpec((tm, Op), lambda i: (i, 0)),
    )
    return pl.pallas_call(
        mlp_kernel,
        out_shape=jax.ShapeDtypeStruct((Mp, Op), out_dtype),
        grid_spec=grid_spec,
        compiler_params=pltpu.CompilerParams(
            dimension_semantics=("parallel" if parallel else "arbitrary",),
            vmem_limit_bytes=vmem_bytes,
        ),
    )


def prepare_mlp_params(Ws, bs, Wo, bo, matmul_dtype=jnp.bfloat16):
    """One-time weight padding/casting (hoisted out of the per-call path)."""
    L, H, _ = Ws.shape
    O = Wo.shape[-1]
    Hp = _round_up(H, 128)   # lane-dense hidden dim
    Op = _round_up(O, 128)   # lane-dense output stores
    w_dt = jnp.dtype(matmul_dtype)
    Ws_p = jnp.zeros((L, Hp, Hp), w_dt).at[:, :H, :H].set(Ws.astype(w_dt))
    bs_p = jnp.zeros((L, 1, Hp), jnp.float32).at[:, 0, :H].set(bs.astype(jnp.float32))
    Wo_p = jnp.zeros((Hp, Op), w_dt).at[:H, :O].set(Wo.astype(w_dt))
    bo_p = jnp.zeros((1, Op), jnp.float32).at[:, :O].set(
        bo.reshape(1, -1).astype(jnp.float32))
    return {"Ws": Ws_p, "bs": bs_p, "Wo": Wo_p, "bo": bo_p,
            "H": H, "O": O, "Hp": Hp, "Op": Op, "L": L}


def mlp_forward(x, params, *, tm=None, out_dtype=jnp.float32):
    """x: (..., H).  params: output of prepare_mlp_params.  Returns (..., O)."""
    H, O = params["H"], params["O"]
    Hp, Op, L = params["Hp"], params["Op"], params["L"]
    assert x.shape[-1] == H, (x.shape, H)
    w_dt = params["Ws"].dtype

    orig_lead = x.shape[:-1]
    x2 = x.reshape(-1, H)
    M = x2.shape[0]

    if tm is None:
        tm = _choose_tm(M)
    tm = max(16, _round_up(tm, 16))
    Mp = _round_up(M, tm)
    n_steps = Mp // tm

    # Stream activations in bf16 (matmul dtype): halves per-step HBM traffic and
    # the double-buffered x-tile VMEM footprint; precision unchanged because the
    # dot casts to bf16 anyway.
    x_p = jnp.zeros((Mp, Hp), w_dt).at[:M, :H].set(x2.astype(w_dt))

    # --- exact VMEM budget ---------------------------------------------------
    weight_mode = pl.Buffered(1) if hasattr(pl, "Buffered") else None
    weight_bufs = 1 if weight_mode is not None else 2
    bytes_w = (params["Ws"].size + params["Wo"].size) * w_dt.itemsize
    bytes_b = (params["bs"].size + params["bo"].size) * 4
    out_itemsize = jnp.dtype(out_dtype).itemsize
    bytes_stream = 2 * tm * Hp * w_dt.itemsize + 2 * tm * Op * out_itemsize
    headroom = 4 * 2**20                      # compiler internal scratch
    need = weight_bufs * (bytes_w + bytes_b) + bytes_stream + headroom

    cap = _vmem_capacity_bytes()
    limit = int(0.75 * cap)                   # ~48 MiB v7x, ~96 MiB v5e/v6e
    if need > limit:
        # TODO(synk): per-layer weight-streaming fallback for huge Hp on v7x.
        raise ValueError(
            f"Resident MLP weights ({bytes_w / 2**20:.1f} MiB, x{weight_bufs}) + "
            f"streamed tiles exceed the VMEM limit ({limit / 2**20:.1f} MiB); "
            f"weight-tiled path not implemented.")
    vmem_bytes = min(max(need, 16 * 2**20), limit)

    # Only megacore-split the M axis when each core would get >= 2 steps;
    # otherwise "arbitrary" avoids duplicating resident weights per core on v7x.
    parallel = n_steps >= 4

    args = (x_p, params["Ws"], params["bs"], params["Wo"], params["bo"])
    try:
        out_p = _build_mlp_call(Mp, Hp, Op, L, tm, out_dtype, vmem_bytes,
                                parallel, weight_mode)(*args)
    except (TypeError, ValueError, pltpu.LoweringException):
        if weight_mode is None:
            raise
        # This Pallas build rejects pipeline_mode=Buffered(1); retry double-buffered.
        out_p = _build_mlp_call(Mp, Hp, Op, L, tm, out_dtype, vmem_bytes,
                                parallel, None)(*args)

    return out_p[:M, :O].reshape(*orig_lead, O)


def init_params(key, n_layer, hidden_dim, output_dim):
    """Deterministic, PyTorch-Linear-like (uniform) initialization."""
    keys = jax.random.split(key, 2 * n_layer + 2)
    bound = 1.0 / jnp.sqrt(hidden_dim)
    Ws = jnp.stack([
        jax.random.uniform(keys[i], (hidden_dim, hidden_dim),
                           minval=-bound, maxval=bound, dtype=jnp.float32)
        for i in range(n_layer)
    ])
    bs = jnp.stack([
        jax.random.uniform(keys[n_layer + i], (hidden_dim,),
                           minval=-bound, maxval=bound, dtype=jnp.float32)
        for i in range(n_layer)
    ])
    Wo = jax.random.uniform(keys[-2], (hidden_dim, output_dim),
                            minval=-bound, maxval=bound, dtype=jnp.float32)
    bo = jax.random.uniform(keys[-1], (1, output_dim),
                            minval=-bound, maxval=bound, dtype=jnp.float32)
    return Ws, bs, Wo, bo


def mlp_reference(x, Ws, bs, Wo, bo, matmul_dtype=jnp.float32):
    """Pure-JAX reference mirroring the kernel's math (same operand dtype/casts).
    NOTE: bf16 matmul operands intentionally diverge from the f32 PyTorch MLP."""
    h = x.astype(matmul_dtype)
    for i in range(Ws.shape[0]):
        acc = jnp.dot(h, Ws[i].astype(matmul_dtype),
                      preferred_element_type=jnp.float32)
        h = jax.nn.relu(acc + bs[i]).astype(matmul_dtype)
    return (jnp.dot(h, Wo.astype(matmul_dtype),
                    preferred_element_type=jnp.float32) + bo[0])


if __name__ == "__main__":
    key = jax.random.PRNGKey(0)
    k_x, k_p = jax.random.split(key)

    n_layer, hidden_dim, output_dim, dpo = 2, 32, 16, 0.2
    batch, seq = 2, 8  # flattened M = 16 -> one 16-row tile (tiny-M path)

    x = jax.random.normal(k_x, (batch, seq, hidden_dim), dtype=jnp.float32)
    Ws, bs, Wo, bo = init_params(k_p, n_layer, hidden_dim, output_dim)

    params = prepare_mlp_params(Ws, bs, Wo, bo)   # one-time pad/cast (hoisted)
    out = mlp_forward(x, params)
    out = jax.block_until_ready(out)

    assert out.shape == (batch, seq, output_dim)
    assert out.dtype == jnp.float32

    # Reference with identical math (bf16 operands, f32 accumulation / epilogue).
    ref = mlp_reference(x, Ws, bs, Wo, bo, matmul_dtype=jnp.bfloat16)
    assert jnp.allclose(out, ref, atol=2e-3, rtol=2e-3), "mismatch vs reference"

    print("KERNEL_OK")
</pallas_src>

<mosaic_0001>
module attributes {stable_mosaic.version = 11 : i64} {
  func.func @mlp_kernel(%arg0: i32, %arg1: memref<16x128xbf16, #tpu.memory_space<vmem>>, %arg2: memref<2x128x128xbf16, #tpu.memory_space<vmem>>, %arg3: memref<2x1x128xf32, #tpu.memory_space<vmem>>, %arg4: memref<128x128xbf16, #tpu.memory_space<vmem>>, %arg5: memref<1x128xf32, #tpu.memory_space<vmem>>, %arg6: memref<16x128xf32, #tpu.memory_space<vmem>>) attributes {dimension_semantics = [#tpu.dimension_semantics<arbitrary>], iteration_bounds = array<i64: 1>, scalar_prefetch = 0 : i64, scratch_operands = 0 : i64, tpu.core_type = #tpu.core_type<tc>, window_params = [{transform_indices = @transform_0, window_bounds = array<i64: 16, 128>}, {pipeline_mode = #tpu.pipeline_mode<synchronous>, transform_indices = @transform_1, window_bounds = array<i64: 2, 128, 128>}, {pipeline_mode = #tpu.pipeline_mode<synchronous>, transform_indices = @transform_2, window_bounds = array<i64: 2, 1, 128>}, {pipeline_mode = #tpu.pipeline_mode<synchronous>, transform_indices = @transform_3, window_bounds = array<i64: 128, 128>}, {pipeline_mode = #tpu.pipeline_mode<synchronous>, transform_indices = @transform_4, window_bounds = array<i64: 1, 128>}, {transform_indices = @transform_5, window_bounds = array<i64: 16, 128>}]} {
    %c0 = arith.constant 0 : index
    %c0_0 = arith.constant 0 : index
    %0 = vector.load %arg1[%c0, %c0_0] : memref<16x128xbf16, #tpu.memory_space<vmem>>, vector<16x128xbf16>
    %c0_1 = arith.constant 0 : index
    %c0_2 = arith.constant 0 : index
    %c0_3 = arith.constant 0 : index
    %1 = vector.load %arg2[%c0_1, %c0_2, %c0_3] : memref<2x128x128xbf16, #tpu.memory_space<vmem>>, vector<1x128x128xbf16>
    %2 = vector.shape_cast %1 : vector<1x128x128xbf16> to vector<128x128xbf16>
    %cst = arith.constant dense<0.000000e+00> : vector<16x128xf32>
    %3 = tpu.matmul %0, %2, %cst {dimension_numbers = #tpu.dot_dimension_numbers<[1], [0], [0], [1], [0, 0, 1, 1], [], []>} : vector<16x128xbf16>, vector<128x128xbf16>, vector<16x128xf32> -> vector<16x128xf32>
    %c0_4 = arith.constant 0 : index
    %c0_5 = arith.constant 0 : index
    %c0_6 = arith.constant 0 : index
    %4 = vector.load %arg3[%c0_4, %c0_5, %c0_6] : memref<2x1x128xf32, #tpu.memory_space<vmem>>, vector<1x1x128xf32>
    %5 = vector.shape_cast %4 : vector<1x1x128xf32> to vector<1x128xf32>
    %6 = vector.broadcast %5 : vector<1x128xf32> to vector<16x128xf32>
    %7 = arith.addf %3, %6 : vector<16x128xf32>
    %cst_7 = arith.constant 0.000000e+00 : f32
    %8 = vector.broadcast %cst_7 : f32 to vector<16x128xf32>
    %9 = arith.maximumf %7, %8 : vector<16x128xf32>
    %10 = arith.truncf %9 : vector<16x128xf32> to vector<16x128xbf16>
    %c1 = arith.constant 1 : index
    %c0_8 = arith.constant 0 : index
    %c0_9 = arith.constant 0 : index
    %11 = vector.load %arg2[%c1, %c0_8, %c0_9] : memref<2x128x128xbf16, #tpu.memory_space<vmem>>, vector<1x128x128xbf16>
    %12 = vector.shape_cast %11 : vector<1x128x128xbf16> to vector<128x128xbf16>
    %cst_10 = arith.constant dense<0.000000e+00> : vector<16x128xf32>
    %13 = tpu.matmul %10, %12, %cst_10 {dimension_numbers = #tpu.dot_dimension_numbers<[1], [0], [0], [1], [0, 0, 1, 1], [], []>} : vector<16x128xbf16>, vector<128x128xbf16>, vector<16x128xf32> -> vector<16x128xf32>
    %c1_11 = arith.constant 1 : index
    %c0_12 = arith.constant 0 : index
    %c0_13 = arith.constant 0 : index
    %14 = vector.load %arg3[%c1_11, %c0_12, %c0_13] : memref<2x1x128xf32, #tpu.memory_space<vmem>>, vector<1x1x128xf32>
    %15 = vector.shape_cast %14 : vector<1x1x128xf32> to vector<1x128xf32>
    %16 = vector.broadcast %15 : vector<1x128xf32> to vector<16x128xf32>
    %17 = arith.addf %13, %16 : vector<16x128xf32>
    %cst_14 = arith.constant 0.000000e+00 : f32
    %18 = vector.broadcast %cst_14 : f32 to vector<16x128xf32>
    %19 = arith.maximumf %17, %18 : vector<16x128xf32>
    %20 = arith.truncf %19 : vector<16x128xf32> to vector<16x128xbf16>
    %c0_15 = arith.constant 0 : index
    %c0_16 = arith.constant 0 : index
    %21 = vector.load %arg4[%c0_15, %c0_16] : memref<128x128xbf16, #tpu.memory_space<vmem>>, vector<128x128xbf16>
    %cst_17 = arith.constant dense<0.000000e+00> : vector<16x128xf32>
    %22 = tpu.matmul %20, %21, %cst_17 {dimension_numbers = #tpu.dot_dimension_numbers<[1], [0], [0], [1], [0, 0, 1, 1], [], []>} : vector<16x128xbf16>, vector<128x128xbf16>, vector<16x128xf32> -> vector<16x128xf32>
    %c0_18 = arith.constant 0 : index
    %c0_19 = arith.constant 0 : index
    %23 = vector.load %arg5[%c0_18, %c0_19] : memref<1x128xf32, #tpu.memory_space<vmem>>, vector<1x128xf32>
    %24 = vector.broadcast %23 : vector<1x128xf32> to vector<16x128xf32>
    %25 = arith.addf %22, %24 : vector<16x128xf32>
    %c0_20 = arith.constant 0 : index
    %c0_21 = arith.constant 0 : index
    %26 = vector.load %arg6[%c0_20, %c0_21] : memref<16x128xf32, #tpu.memory_space<vmem>>, vector<16x128xf32>
    tpu.vector_store %arg6[%c0_20, %c0_21], %25 {strides = array<i32>} : memref<16x128xf32, #tpu.memory_space<vmem>>, vector<16x128xf32>,
    return
  }
  func.func @transform_0(%arg0: i32) -> (i32, i32) {
    %c0_i32 = arith.constant 0 : i32
    %c0_i32_0 = arith.constant 0 : i32
    return %arg0, %c0_i32 : i32, i32
  }
  func.func @transform_1(%arg0: i32) -> (i32, i32, i32) {
    %c0_i32 = arith.constant 0 : i32
    %c0_i32_0 = arith.constant 0 : i32
    %c0_i32_1 = arith.constant 0 : i32
    %c0_i32_2 = arith.constant 0 : i32
    return %c0_i32, %c0_i32_0, %c0_i32_1 : i32, i32, i32
  }
  func.func @transform_2(%arg0: i32) -> (i32, i32, i32) {
    %c0_i32 = arith.constant 0 : i32
    %c0_i32_0 = arith.constant 0 : i32
    %c0_i32_1 = arith.constant 0 : i32
    %c0_i32_2 = arith.constant 0 : i32
    return %c0_i32, %c0_i32_0, %c0_i32_1 : i32, i32, i32
  }
  func.func @transform_3(%arg0: i32) -> (i32, i32) {
    %c0_i32 = arith.constant 0 : i32
    %c0_i32_0 = arith.constant 0 : i32
    %c0_i32_1 = arith.constant 0 : i32
    return %c0_i32, %c0_i32_0 : i32, i32
  }
  func.func @transform_4(%arg0: i32) -> (i32, i32) {
    %c0_i32 = arith.constant 0 : i32
    %c0_i32_0 = arith.constant 0 : i32
    %c0_i32_1 = arith.constant 0 : i32
    return %c0_i32, %c0_i32_0 : i32, i32
  }
  func.func @transform_5(%arg0: i32) -> (i32, i32) {
    %c0_i32 = arith.constant 0 : i32
    %c0_i32_0 = arith.constant 0 : i32
    return %arg0, %c0_i32 : i32, i32
  }
}

</mosaic_0001>

<bundles_post_ra>
// kernel: tpu_custom_call.1
= control target key start
LH: loop header
LB: loop body
LE: loop exit
PB: predicated region body
PF: predicated region fallthrough
CT: control target
= control target key end

     0   :  { %10 = vsyncpa [#allocation3], 0  ;;  %s763_s0 = inlined_call_operand.hbm [shape: bf16[16,128], index: 0, kind: input, shape index: {}]   ;;  %s764_s1 = inlined_call_operand.hbm [shape: bf16[2,128,128], index: 1, kind: input, shape index: {}]   ;;  %s765_s2 = inlined_call_operand.vmem [shape: f32[2,1,128], index: 2, kind: input, shape index: {}]   ;;  %s766_s3 = inlined_call_operand.hbm [shape: bf16[128,128], index: 3, kind: input, shape index: {}]   ;;  %s767_s4 = inlined_call_operand.vmem [shape: f32[1,128], index: 4, kind: input, shape index: {}]   ;;  %s768_s5 = inlined_call_operand.hbm [shape: f32[16,128], index: 5, kind: output, shape index: {}]  }
   0x1   :  { %11 = vsyncpa [#allocation6], 0 }
   0x2   :  { %12 = vsyncpa [#allocation4], 0  ;;  %s672_s18 = smov [#allocation5]   ;;  %s673_s20 = smov [#allocation2]  }
   0x3   :  { %s30_s19 = sshll.u32 %s672_s18, 4  ;;  %s18_s21 = sshll.u32 %s673_s20, 4  ;;  %s31_s19 = int_to_ptr.vmem [resolvable:$true] %s30_s19  ;;  %s19_s21 = int_to_ptr.vmem [resolvable:$true] %s18_s21 }
   0x4   :  { %s594_s22 = scalar_lea.vmem %s31_s19, 2048  ;;  %p599_p1 = scmp.lt.s32.totalorder %s31_s19, %s31_s19 }
   0x5   :  { %p595_p0 = scmp.ne.s32.totalorder %s31_s19, %s594_s22  ;;  %p600_p2 = scmp.lt.s32.totalorder %s594_s22, %s594_s22 }
   0x7   :  { %p601_p3 = por %p600_p2, %p599_p1 }
   0x9   :  { %p602_p4 = pnand %p601_p3, %p595_p0 }
   0xb   :  { %605 = shalt.err (!%p602_p4)
}
   0xc   :  { %s674_s23 = smov 64   ;;  %s675_s24 = smov 4  }
   0xd   :  { %36 = dma.hbm_to_vmem [thread:$0]  %s764_s1, 2048, %s31_s19, [#allocation6], %s674_s23, %s674_s23, %s675_s24  }
   0xe   :  { %s614_s27 = scalar_lea.vmem %s19_s21, 128  ;;  %p619_p6 = scmp.lt.s32.totalorder %s19_s21, %s19_s21 }
   0xf   :  { %p615_p5 = scmp.ne.s32.totalorder %s19_s21, %s614_s27  ;;  %p620_p7 = scmp.lt.s32.totalorder %s614_s27, %s614_s27 }
  0x11   :  { %p621_p8 = por %p620_p7, %p619_p6 }
  0x13   :  { %p622_p9 = pnand %p621_p8, %p615_p5 }
  0x15   :  { %625 = shalt.err (!%p622_p9)
}
  0x16   :  { %24 = dma.hbm_to_vmem [thread:$0]  %s763_s0, 128, %s19_s21, [#allocation3], %s674_s23, %s674_s23, %s675_s24  }
  0x17   :  { %s676_s30 = smov [#allocation7]  }
  0x18   :  { %s44_s6 = sshll.u32 %s676_s30, 4  ;;  %s45_s6 = int_to_ptr.vmem [resolvable:$true] %s44_s6 }
  0x19   :  { %s634_s7 = scalar_lea.vmem %s45_s6, 1024  ;;  %p639_p11 = scmp.lt.s32.totalorder %s45_s6, %s45_s6 }
  0x1a   :  { %p635_p10 = scmp.ne.s32.totalorder %s45_s6, %s634_s7  ;;  %p640_p12 = scmp.lt.s32.totalorder %s634_s7, %s634_s7 }
  0x1c   :  { %p641_p13 = por %p640_p12, %p639_p11 }
  0x1e   :  { %p642_p0 = pnand %p641_p13, %p635_p10 }
  0x20   :  { %645 = shalt.err (!%p642_p0)
}
  0x21   :  { %50 = dma.hbm_to_vmem [thread:$0]  %s766_s3, 1024, %s45_s6, [#allocation6], %s674_s23, %s674_s23, %s675_s24  }
  0x22   :  { %666 = dma.done.wait [#allocation3], 128  }
  0x23   :  { %667 = vsyncadd [#allocation3], 4294967168 }
  0x24   :  { %668 = dma.done.wait [#allocation6], 3072  }
  0x25   :  { %669 = vsyncadd [#allocation6], 4294964224  ;;  %v677_v0 = vmov 0.0   ;;  %vm678_vm0 = vmmov 0   ;;  %v561_v1 = vld [vmem:[#allocation5 + $0x38] sm:$0xff]   ;;  %v562_v2 = vld [vmem:[#allocation5 + $0x30] sm:$0xff]  }
  0x26   :  { %491 = vmatprep.subr.bf16.mxu0 %v677_v0  ;;  %507 = vmatprep.mubr.msk.bf16.mxu0 %vm678_vm0, %v677_v0  ;;  %v563_v3 = vld [vmem:[#allocation5 + $0x28] sm:$0xff]   ;;  %v570_v4 = vld [vmem:[#allocation5 + $0x78] sm:$0xff]   ;;  %v564_v5 = vld [vmem:[#allocation5 + $0x20] sm:$0xff]   ;;  %s679_s13 = smov [#allocation8]  }
  0x27   :  { %511 = vmatprep.subr.bf16.mxu1 %v677_v0  ;;  %527 = vmatprep.mubr.msk.bf16.mxu1 %vm678_vm0, %v677_v0  ;;  %v571_v6 = vld [vmem:[#allocation5 + $0x70] sm:$0xff]   ;;  %v565_v7 = vld [vmem:[#allocation5 + $0x18] sm:$0xff]   ;;  %v572_v8 = vld [vmem:[#allocation5 + $0x68] sm:$0xff]   ;;  %s422_s14 = sshll.u32 %s679_s13, 4  ;;  %s423_s14 = int_to_ptr.vmem [resolvable:$true] %s422_s14 }
  0x28   :  { %492 = vmatpush3.bf16.msra.mxu0 %v561_v1  ;;  %512 = vmatpush3.bf16.msra.mxu1 %v570_v4  ;;  %v566_v9 = vld [vmem:[#allocation5 + $0x10] sm:$0xff]   ;;  %v573_v10 = vld [vmem:[#allocation5 + $0x60] sm:$0xff]   ;;  %v567_v11 = vld [vmem:[#allocation5 + $0x8] sm:$0xff]   ;;  %p651_p2 = scmp.lt.s32.totalorder %s423_s14, %s423_s14 }
  0x29   :  { %493 = vmatprep.subr.bf16.mxu0 %v677_v0  ;;  %513 = vmatprep.subr.bf16.mxu1 %v677_v0  ;;  %v574_v12 = vld [vmem:[#allocation5 + $0x58] sm:$0xff]   ;;  %v568_v13 = vld [vmem:[#allocation5] sm:$0xff]   ;;  %v575_v15 = vld [vmem:[#allocation5 + $0x50] sm:$0xff]  }
  0x2a   :  { %v569_v14 = vld [vmem:[#allocation2] sm:$0xff]   ;;  %v576_v16 = vld [vmem:[#allocation5 + $0x48] sm:$0xff]   ;;  %v577_v17 = vld [vmem:[#allocation5 + $0x40] sm:$0xff]  }
  0x2b   :  { %v578_v18 = vld [vmem:[#allocation7 + $0x38] sm:$0xff]   ;;  %v579_v19 = vld [vmem:[#allocation7 + $0x30] sm:$0xff]   ;;  %v580_v20 = vld [vmem:[#allocation7 + $0x28] sm:$0xff]  }
  0x2c   :  { %494 = vmatpush3.bf16.msra.mxu0 %v562_v2  ;;  %514 = vmatpush3.bf16.msra.mxu1 %v571_v6  ;;  %v581_v21 = vld [vmem:[#allocation7 + $0x20] sm:$0xff]   ;;  %v582_v22 = vld [vmem:[#allocation7 + $0x18] sm:$0xff]   ;;  %v583_v33 = vld [vmem:[#allocation7 + $0x10] sm:$0xff]  }
  0x2d   :  { %495 = vmatprep.subr.bf16.mxu0 %v677_v0  ;;  %515 = vmatprep.subr.bf16.mxu1 %v677_v0  ;;  %v435_v23 = vld [vmem:[%s765_s2] ss:$0 sm:$0xff]  ;;  %v584_v34 = vld [vmem:[#allocation7 + $0x8] sm:$0xff]   ;;  %v585_v35 = vld [vmem:[#allocation7] sm:$0xff]  }
  0x2e   :  { %v446_v36 = vld [vmem:[%s765_s2 + $0x1] ss:$0 sm:$0xff]  ;;  %v455_v46 = vld [vmem:[%s767_s4] ss:$0 sm:$0xff]  ;;  %s646_s2 = scalar_lea.vmem %s423_s14, 256 }
  0x2f   :  { %p647_p1 = scmp.ne.s32.totalorder %s423_s14, %s646_s2  ;;  %p652_p3 = scmp.lt.s32.totalorder %s646_s2, %s646_s2 }
  0x30   :  { %496 = vmatpush3.bf16.msra.mxu0 %v563_v3  ;;  %516 = vmatpush3.bf16.msra.mxu1 %v572_v8 }
  0x31   :  { %497 = vmatprep.subr.bf16.mxu0 %v677_v0  ;;  %517 = vmatprep.subr.bf16.mxu1 %v677_v0  ;;  %p653_p4 = por %p652_p3, %p651_p2 }
  0x33   :  { %p654_p5 = pnand %p653_p4, %p647_p1 }
  0x34   :  { %498 = vmatpush3.bf16.msra.mxu0 %v564_v5  ;;  %518 = vmatpush3.bf16.msra.mxu1 %v573_v10 }
  0x35   :  { %499 = vmatprep.subr.bf16.mxu0 %v677_v0  ;;  %519 = vmatprep.subr.bf16.mxu1 %v677_v0 }
  0x38   :  { %500 = vmatpush3.bf16.msra.mxu0 %v565_v7  ;;  %520 = vmatpush3.bf16.msra.mxu1 %v574_v12 }
  0x39   :  { %501 = vmatprep.subr.bf16.mxu0 %v677_v0  ;;  %521 = vmatprep.subr.bf16.mxu1 %v677_v0 }
  0x3c   :  { %502 = vmatpush3.bf16.msra.mxu0 %v566_v9  ;;  %522 = vmatpush3.bf16.msra.mxu1 %v575_v15 }
  0x3d   :  { %503 = vmatprep.subr.bf16.mxu0 %v677_v0  ;;  %523 = vmatprep.subr.bf16.mxu1 %v677_v0 }
  0x40   :  { %504 = vmatpush3.bf16.msra.mxu0 %v567_v11  ;;  %524 = vmatpush3.bf16.msra.mxu1 %v576_v16 }
  0x41   :  { %505 = vmatprep.subr.bf16.mxu0 %v677_v0  ;;  %525 = vmatprep.subr.bf16.mxu1 %v677_v0 }
  0x44   :  { %506 = vmatpush3.bf16.msra.mxu0 %v568_v13  ;;  %526 = vmatpush3.bf16.msra.mxu1 %v577_v17 }
  0x45   :  { %531 = vmatprep.subr.bf16.mxu0 %v677_v0 }
  0x47   :  { %508 = vmatmul.mubr.bf16.vlgmr.msra.gmra.mxu0 %v569_v14 }
  0x48   :  { %547 = vmatprep.mubr.msk.bf16.mxu0 %vm678_vm0, %v677_v0  ;;  %532 = vmatpush3.bf16.msra.mxu0 %v578_v18 }
  0x49   :  { %533 = vmatprep.subr.bf16.mxu0 %v677_v0 }
  0x4c   :  { %534 = vmatpush3.bf16.msra.mxu0 %v579_v19 }
  0x4d   :  { %535 = vmatprep.subr.bf16.mxu0 %v677_v0 }
  0x50   :  { %536 = vmatpush3.bf16.msra.mxu0 %v580_v20 }
  0x51   :  { %537 = vmatprep.subr.bf16.mxu0 %v677_v0 }
  0x54   :  { %538 = vmatpush3.bf16.msra.mxu0 %v581_v21 }
  0x55   :  { %539 = vmatprep.subr.bf16.mxu0 %v677_v0 }
  0x58   :  { %540 = vmatpush3.bf16.msra.mxu0 %v582_v22 }
  0x59   :  { %541 = vmatprep.subr.bf16.mxu0 %v677_v0 }
  0x5c   :  { %542 = vmatpush3.bf16.msra.mxu0 %v583_v33 }
  0x5d   :  { %543 = vmatprep.subr.bf16.mxu0 %v677_v0 }
  0x60   :  { %544 = vmatpush3.bf16.msra.mxu0 %v584_v34 }
  0x61   :  { %545 = vmatprep.subr.bf16.mxu0 %v677_v0 }
  0x64   :  { %546 = vmatpush3.bf16.msra.mxu0 %v585_v35 }
 0x107   :  { %v176_v24 = vpop.f32.mrf.mxu0 }
 0x108   :  { %v177_v26 = vadd.f32 %v435_v23, %v176_v24 }
 0x109   :  { %v509_v25 = vpop.f32.mrf.mxu0 }
 0x10a   :  { %v183_v30 = vmax.f32 %v177_v26, 0.0 }
 0x10b   :  { %v179_v27 = vpop.f32.mrf.mxu0 }
 0x10c   :  { %v180_v28 = vadd.f32 %v435_v23, %v179_v27 }
 0x10d   :  { %v510_v29 = vpop.f32.mrf.mxu0 }
 0x10e   :  { %v184_v31 = vmax.f32 %v180_v28, 0.0 }
 0x110   :  { %v185_v32 = vpack.c.bf16 %v184_v31, %v183_v30 }
 0x112   :  { %528 = vmatmul.mubr.bf16.vlgmr.msra.gmra.mxu1 %v185_v32 }
 0x1d2   :  { %v293_v37 = vpop.f32.mrf.mxu1 }
 0x1d3   :  { %v294_v39 = vadd.f32 %v446_v36, %v293_v37 }
 0x1d4   :  { %v529_v38 = vpop.f32.mrf.mxu1 }
 0x1d5   :  { %v300_v43 = vmax.f32 %v294_v39, 0.0 }
 0x1d6   :  { %v296_v40 = vpop.f32.mrf.mxu1 }
 0x1d7   :  { %v297_v41 = vadd.f32 %v446_v36, %v296_v40 }
 0x1d8   :  { %v530_v42 = vpop.f32.mrf.mxu1 }
 0x1d9   :  { %v301_v44 = vmax.f32 %v297_v41, 0.0 }
 0x1db   :  { %v302_v45 = vpack.c.bf16 %v301_v44, %v300_v43 }
 0x1dd   :  { %548 = vmatmul.mubr.bf16.vlgmr.msra.gmra.mxu0 %v302_v45 }
 0x29d   :  { %v408_v47 = vpop.f32.mrf.mxu0 }
 0x29e   :  { %v409_v48 = vadd.f32 %v455_v46, %v408_v47 }
 0x29f   :  { %v549_v49 = vpop.f32.mrf.mxu0 }
 0x2a0   :  { %415 = vst [vmem:[#allocation8] sm:$0xff] %v409_v48 }
 0x2a1   :  { %v411_v50 = vpop.f32.mrf.mxu0 }
 0x2a2   :  { %v412_v51 = vadd.f32 %v455_v46, %v411_v50 }
 0x2a3   :  { %v550_v52 = vpop.f32.mrf.mxu0 }
 0x2a4   :  { %416 = vst [vmem:[#allocation8 + $0x8] sm:$0xff] %v412_v51 }
 0x2a5   :  { %657 = shalt.err (!%p654_p5)
}
 0x2a6   :  { %s680_s15 = smov 128   ;;  %s681_s4 = smov 8  }
 0x2a7   :  { %428 = dma.vmem_to_hbm [thread:$0]  %s423_s14, 256, %s768_s5, [#allocation4], %s680_s15, %s680_s15, %s681_s4  }
 0x2a8   :  { %670 = dma.done.wait [#allocation4], 256  }
 0x2a9   :  { %671 = vsyncadd [#allocation4], 4294967040 }
 0x2aa   :  { %432 = vsyncpa [#allocation3], 1 }
 0x2ab   :  { %433 = vsyncpa [#allocation6], 1 }
 0x2ac   :  { %434 = vsyncpa [#allocation4], 1 }

</bundles_post_ra>
